<compile_context>
chip_gen: v7x
topology: tpu7x:2x2x1
jax: 0.10.0
libtpu: 0.0.40
codegen_flags: <defaults>
</compile_context>

<pallas_src>
import functools

import jax
import jax.numpy as jnp
import numpy as np
from jax.experimental import pallas as pl
from jax.experimental.pallas import tpu as pltpu

# Module constants (from the reference script)
K = 100          # hidden width
S = 3            # spatial dim per body
NOP = 2          # number of bodies
NLAYERS = 2
DIM_Q = S * NOP          # 6
DIM_X = 2 * S * NOP      # 12

KP = 128         # hidden width padded to the full 128-lane width
QP = 8           # q/p feature width padded to a sublane multiple


def _dot3(x, y):
    """Batch-major 3-vector dot: [B,3]·[B,3] -> [B,1] (3-lane XLU reduce)."""
    return jnp.sum(x * y, axis=-1, keepdims=True)


def hamiltonian_kernel(scal_ref,            # SMEM (6,): [b, 1/a, c/a, t, alpha, 1/alpha]
                       q_ref, p_ref,        # VMEM [TB, 8]   (lanes 6..7 are zero padding)
                       w0_ref, b0_ref,      # [8,128], [1,128]
                       w1_ref, b1_ref,      # [128,128], [1,128]
                       w2_ref, b2_ref,      # [128,128], [1,128]
                       w3_ref,              # [1,128]   (OV weights as a row, no bias)
                       o_ref):              # VMEM [TB, 1]
    q = q_ref[...]
    p = p_ref[...]

    # ---------------- Potential: MLP on the MXU (TB x 128 tiles) ----------------
    h = jnp.tanh(jnp.dot(q, w0_ref[...], preferred_element_type=jnp.float32) + b0_ref[...])
    h = jnp.tanh(jnp.dot(h, w1_ref[...], preferred_element_type=jnp.float32) + b1_ref[...])
    h = jnp.tanh(jnp.dot(h, w2_ref[...], preferred_element_type=jnp.float32) + b2_ref[...])
    # Linear(K, 1, bias=False): a 1-column MXU push is wasted work -> VPU mul + lane reduce.
    v_pot = jnp.sum(h * w3_ref[...], axis=-1, keepdims=True)            # [TB,1]

    # ---------------- Kinetic: exact closed-form block solve ----------------
    # MM = [[a*I, b*(I - u u^T)], [c*(I - v v^T), d*I]], u = q0, v = q1.
    # Schur complement S = alpha*I + w u^T + t v v^T  (alpha = d - t, t = b*c/a,
    # w = t*(u - (v.u) v)), inverted with two Sherman-Morrison rank-1 updates.
    b_s = scal_ref[0]
    inv_a = scal_ref[1]
    c_over_a = scal_ref[2]
    t_s = scal_ref[3]
    alpha = scal_ref[4]
    inv_alpha = scal_ref[5]

    u = q[:, 0:3]          # q0
    v = q[:, 3:6]          # q1
    p1 = p[:, 0:3]
    p2 = p[:, 3:6]

    # r = p2 - (c/a) * (I - v v^T) p1
    bp1 = p1 - v * _dot3(v, p1)
    r = p2 - c_over_a * bp1

    # w = t * (u - (v.u) v)
    w_vec = t_s * (u - _dot3(v, u) * v)

    # (alpha*I + w u^T)^{-1} x = (x - w * (u.x)/(alpha + u.w)) / alpha
    inv_den1 = 1.0 / (alpha + _dot3(u, w_vec))                           # [TB,1]
    z1 = inv_alpha * (r - w_vec * (_dot3(u, r) * inv_den1))
    z2 = inv_alpha * (v - w_vec * (_dot3(u, v) * inv_den1))

    # second rank-1 update (+ t v v^T):  y2 = S^{-1} r
    y2 = z1 - z2 * (t_s * _dot3(v, z1) / (1.0 + t_s * _dot3(v, z2)))
    # back-substitute block row 0:  y1 = (p1 - b (I - u u^T) y2) / a
    y1 = inv_a * (p1 - b_s * (y2 - u * _dot3(u, y2)))

    kin = 0.5 * (_dot3(p1, y1) + _dot3(p2, y2))                          # [TB,1]

    o_ref[...] = v_pot + kin


def prepare_params(gamma, bvec, w0, b0, w1, b1, w2, b2, w3):
    """One-time parameter prep (hoisted out of the per-call path).

    Weights arrive in PyTorch layout ([out, in]); here they are transposed to [in, out],
    zero-padded to MXU/lane-friendly shapes (hidden 100->128, input 6->8) and cast once.
    Zero padding keeps the real 100 outputs bit-identical. The 2x2 mass-coefficient matrix
    M = Gamma^T Gamma + diag(B)^2 is reduced to the 6 scalars the kernel needs.
    """
    f32 = jnp.float32
    g = gamma.astype(f32)
    m = g.T @ g + jnp.diag(bvec.astype(f32)) ** 2
    a, b, c, d = m[0, 0], m[0, 1], m[1, 0], m[1, 1]
    inv_a = 1.0 / a
    c_over_a = c * inv_a
    t = b * c_over_a
    alpha = d - t
    scal = jnp.stack([b, inv_a, c_over_a, t, alpha, 1.0 / alpha]).astype(f32)

    def pad_to(x, rows, cols):
        x = x.astype(f32)
        return jnp.pad(x, ((0, rows - x.shape[0]), (0, cols - x.shape[1])))

    # NOTE(perf): store these as bfloat16 on v5e/v6e/v7x (f32 accumulation in the dots)
    # when training tolerances allow; kept float32 here for tight validation.
    return (
        scal,
        pad_to(w0.T, QP, KP), pad_to(b0.reshape(1, K), 1, KP),
        pad_to(w1.T, KP, KP), pad_to(b1.reshape(1, K), 1, KP),
        pad_to(w2.T, KP, KP), pad_to(b2.reshape(1, K), 1, KP),
        pad_to(w3.reshape(1, K), 1, KP),
    )


@functools.partial(jax.jit, static_argnames=("block_b",))
def hamiltonian_forward(params, x, *, block_b=256):
    """x: [B, 12] float32.  params: output of prepare_params."""
    scal, w0p, b0p, w1p, b1p, w2p, b2p, w3p = params
    bsz = x.shape[0]
    x = x.astype(jnp.float32)

    # Split q/p once in XLA (fuses into the surrounding ops); kernel sees lane-contiguous inputs.
    q = jnp.concatenate([x[:, 0:3], x[:, 6:9]], axis=1)      # [B,6]
    p = jnp.concatenate([x[:, 3:6], x[:, 9:12]], axis=1)     # [B,6]

    def round_up(n, m):
        return (n + m - 1) // m * m

    block_b = round_up(block_b, 8)
    tb = block_b if bsz >= block_b else round_up(bsz, 8)
    pb = round_up(bsz, tb)
    q = jnp.pad(q, ((0, pb - bsz), (0, QP - DIM_Q)))
    p = jnp.pad(p, ((0, pb - bsz), (0, QP - DIM_Q)))

    const = lambda i: (0, 0)
    batch = lambda i: (i, 0)

    out = pl.pallas_call(
        hamiltonian_kernel,
        out_shape=jax.ShapeDtypeStruct((pb, 1), jnp.float32),
        grid=(pb // tb,),
        in_specs=[
            pl.BlockSpec(memory_space=pltpu.MemorySpace.SMEM),   # mass-matrix scalars
            pl.BlockSpec((tb, QP), batch),                       # q
            pl.BlockSpec((tb, QP), batch),                       # p
            pl.BlockSpec((QP, KP), const),                       # w0
            pl.BlockSpec((1, KP), const),                        # b0
            pl.BlockSpec((KP, KP), const),                       # w1
            pl.BlockSpec((1, KP), const),                        # b1
            pl.BlockSpec((KP, KP), const),                       # w2
            pl.BlockSpec((1, KP), const),                        # b2
            pl.BlockSpec((1, KP), const),                        # w3
        ],
        out_specs=pl.BlockSpec((tb, 1), batch),
        compiler_params=pltpu.CompilerParams(dimension_semantics=("parallel",)),
    )(scal, q, p, w0p, b0p, w1p, b1p, w2p, b2p, w3p)
    return out[:bsz]


def reference_forward(x, gamma, bvec, w0, b0, w1, b1, w2, b2, w3):
    """Pure-JAX mirror of the PyTorch forward (for verification)."""
    q = jnp.concatenate([x[:, 0:3], x[:, 6:9]], axis=1)
    p = jnp.concatenate([x[:, 3:6], x[:, 9:12]], axis=1)
    h = jnp.tanh(q @ w0.T + b0)
    h = jnp.tanh(h @ w1.T + b1)
    h = jnp.tanh(h @ w2.T + b2)
    v = h @ w3.T
    m = gamma.T @ gamma + jnp.diag(bvec) ** 2
    bsz = x.shape[0]
    i3b = jnp.broadcast_to(jnp.eye(3), (bsz, 3, 3))
    q0, q1 = q[:, :3], q[:, 3:]
    out0 = jnp.einsum('ij,ik->ijk', q0, q0)
    out1 = jnp.einsum('ij,ik->ijk', q1, q1)
    top = jnp.concatenate([m[0, 0] * i3b, m[0, 1] * (i3b - out0)], axis=2)
    bot = jnp.concatenate([m[1, 0] * (i3b - out1), m[1, 1] * i3b], axis=2)
    mm = jnp.concatenate([top, bot], axis=1)
    y = jnp.linalg.solve(mm, p[..., None])[..., 0]
    kin = 0.5 * jnp.sum(p * y, axis=1, keepdims=True)
    return v + kin


if __name__ == "__main__":
    key = jax.random.PRNGKey(0)
    ks = jax.random.split(key, 10)
    B = 12   # deliberately not a multiple of 8: exercises batch padding + output slicing

    # Deterministic synthetic parameters (shapes from Hamiltonian.__init__)
    x = 0.5 * jax.random.normal(ks[0], (B, DIM_X), jnp.float32)
    gamma = jax.random.uniform(ks[1], (NOP, NOP), jnp.float32)
    bvec = jax.random.uniform(ks[2], (NOP,), jnp.float32)

    def init_linear(kw, kb, fan_in, fan_out):
        bound = 1.0 / (fan_in ** 0.5)
        w = jax.random.uniform(kw, (fan_out, fan_in), jnp.float32, -bound, bound)
        b = jax.random.uniform(kb, (fan_out,), jnp.float32, -bound, bound)
        return w, b

    w0, b0 = init_linear(ks[3], ks[4], DIM_Q, K)   # IV
    w1, b1 = init_linear(ks[5], ks[6], K, K)       # hidden 1
    w2, b2 = init_linear(ks[7], ks[8], K, K)       # hidden 2
    w3 = jax.random.uniform(ks[9], (1, K), jnp.float32, -0.1, 0.1)  # OV (no bias)

    # One-time layout work (transpose / pad / cast / mass-matrix scalars)
    params = jax.block_until_ready(prepare_params(gamma, bvec, w0, b0, w1, b1, w2, b2, w3))

    out = jax.block_until_ready(hamiltonian_forward(params, x))
    ref = jax.block_until_ready(reference_forward(x, gamma, bvec, w0, b0, w1, b1, w2, b2, w3))
    assert out.shape == (B, 1)
    np.testing.assert_allclose(np.asarray(out), np.asarray(ref), rtol=1e-2, atol=1e-2)

    # Also exercise the batch-tiled grid path (grid > 1)
    B2 = 48
    x2 = 0.5 * jax.random.normal(jax.random.PRNGKey(1), (B2, DIM_X), jnp.float32)
    out2 = jax.block_until_ready(hamiltonian_forward(params, x2, block_b=16))
    ref2 = jax.block_until_ready(reference_forward(x2, gamma, bvec, w0, b0, w1, b1, w2, b2, w3))
    assert out2.shape == (B2, 1)
    np.testing.assert_allclose(np.asarray(out2), np.asarray(ref2), rtol=1e-2, atol=1e-2)

    print("KERNEL_OK")
</pallas_src>

<mosaic_0001>
module attributes {stable_mosaic.version = 11 : i64} {
  func.func @hamiltonian_kernel(%arg0: i32, %arg1: memref<6xf32, #tpu.memory_space<smem>>, %arg2: memref<16x8xf32, #tpu.memory_space<vmem>>, %arg3: memref<16x8xf32, #tpu.memory_space<vmem>>, %arg4: memref<8x128xf32, #tpu.memory_space<vmem>>, %arg5: memref<1x128xf32, #tpu.memory_space<vmem>>, %arg6: memref<128x128xf32, #tpu.memory_space<vmem>>, %arg7: memref<1x128xf32, #tpu.memory_space<vmem>>, %arg8: memref<128x128xf32, #tpu.memory_space<vmem>>, %arg9: memref<1x128xf32, #tpu.memory_space<vmem>>, %arg10: memref<1x128xf32, #tpu.memory_space<vmem>>, %arg11: memref<16x1xf32, #tpu.memory_space<vmem>>) attributes {dimension_semantics = [#tpu.dimension_semantics<parallel>], iteration_bounds = array<i64: 1>, scalar_prefetch = 0 : i64, scratch_operands = 0 : i64, tpu.core_type = #tpu.core_type<tc>, window_params = [{transform_indices = @transform_0, window_bounds = array<i64: 6>}, {transform_indices = @transform_1, window_bounds = array<i64: 16, 8>}, {transform_indices = @transform_2, window_bounds = array<i64: 16, 8>}, {pipeline_mode = #tpu.pipeline_mode<synchronous>, transform_indices = @transform_3, window_bounds = array<i64: 8, 128>}, {pipeline_mode = #tpu.pipeline_mode<synchronous>, transform_indices = @transform_4, window_bounds = array<i64: 1, 128>}, {pipeline_mode = #tpu.pipeline_mode<synchronous>, transform_indices = @transform_5, window_bounds = array<i64: 128, 128>}, {pipeline_mode = #tpu.pipeline_mode<synchronous>, transform_indices = @transform_6, window_bounds = array<i64: 1, 128>}, {pipeline_mode = #tpu.pipeline_mode<synchronous>, transform_indices = @transform_7, window_bounds = array<i64: 128, 128>}, {pipeline_mode = #tpu.pipeline_mode<synchronous>, transform_indices = @transform_8, window_bounds = array<i64: 1, 128>}, {pipeline_mode = #tpu.pipeline_mode<synchronous>, transform_indices = @transform_9, window_bounds = array<i64: 1, 128>}, {transform_indices = @transform_10, window_bounds = array<i64: 16, 1>}]} {
    %c0 = arith.constant 0 : index
    %c0_0 = arith.constant 0 : index
    %0 = vector.load %arg2[%c0, %c0_0] : memref<16x8xf32, #tpu.memory_space<vmem>>, vector<16x8xf32>
    %c0_1 = arith.constant 0 : index
    %c0_2 = arith.constant 0 : index
    %1 = vector.load %arg3[%c0_1, %c0_2] : memref<16x8xf32, #tpu.memory_space<vmem>>, vector<16x8xf32>
    %c0_3 = arith.constant 0 : index
    %c0_4 = arith.constant 0 : index
    %2 = vector.load %arg4[%c0_3, %c0_4] : memref<8x128xf32, #tpu.memory_space<vmem>>, vector<8x128xf32>
    %cst = arith.constant dense<0.000000e+00> : vector<16x128xf32>
    %3 = tpu.matmul %0, %2, %cst {dimension_numbers = #tpu.dot_dimension_numbers<[1], [0], [0], [1], [0, 0, 1, 1], [], []>} : vector<16x8xf32>, vector<8x128xf32>, vector<16x128xf32> -> vector<16x128xf32>
    %c0_5 = arith.constant 0 : index
    %c0_6 = arith.constant 0 : index
    %4 = vector.load %arg5[%c0_5, %c0_6] : memref<1x128xf32, #tpu.memory_space<vmem>>, vector<1x128xf32>
    %5 = vector.broadcast %4 : vector<1x128xf32> to vector<16x128xf32>
    %6 = arith.addf %3, %5 : vector<16x128xf32>
    %7 = math.tanh %6 : vector<16x128xf32>
    %c0_7 = arith.constant 0 : index
    %c0_8 = arith.constant 0 : index
    %8 = vector.load %arg6[%c0_7, %c0_8] : memref<128x128xf32, #tpu.memory_space<vmem>>, vector<128x128xf32>
    %cst_9 = arith.constant dense<0.000000e+00> : vector<16x128xf32>
    %9 = tpu.matmul %7, %8, %cst_9 {dimension_numbers = #tpu.dot_dimension_numbers<[1], [0], [0], [1], [0, 0, 1, 1], [], []>} : vector<16x128xf32>, vector<128x128xf32>, vector<16x128xf32> -> vector<16x128xf32>
    %c0_10 = arith.constant 0 : index
    %c0_11 = arith.constant 0 : index
    %10 = vector.load %arg7[%c0_10, %c0_11] : memref<1x128xf32, #tpu.memory_space<vmem>>, vector<1x128xf32>
    %11 = vector.broadcast %10 : vector<1x128xf32> to vector<16x128xf32>
    %12 = arith.addf %9, %11 : vector<16x128xf32>
    %13 = math.tanh %12 : vector<16x128xf32>
    %c0_12 = arith.constant 0 : index
    %c0_13 = arith.constant 0 : index
    %14 = vector.load %arg8[%c0_12, %c0_13] : memref<128x128xf32, #tpu.memory_space<vmem>>, vector<128x128xf32>
    %cst_14 = arith.constant dense<0.000000e+00> : vector<16x128xf32>
    %15 = tpu.matmul %13, %14, %cst_14 {dimension_numbers = #tpu.dot_dimension_numbers<[1], [0], [0], [1], [0, 0, 1, 1], [], []>} : vector<16x128xf32>, vector<128x128xf32>, vector<16x128xf32> -> vector<16x128xf32>
    %c0_15 = arith.constant 0 : index
    %c0_16 = arith.constant 0 : index
    %16 = vector.load %arg9[%c0_15, %c0_16] : memref<1x128xf32, #tpu.memory_space<vmem>>, vector<1x128xf32>
    %17 = vector.broadcast %16 : vector<1x128xf32> to vector<16x128xf32>
    %18 = arith.addf %15, %17 : vector<16x128xf32>
    %19 = math.tanh %18 : vector<16x128xf32>
    %c0_17 = arith.constant 0 : index
    %c0_18 = arith.constant 0 : index
    %20 = vector.load %arg10[%c0_17, %c0_18] : memref<1x128xf32, #tpu.memory_space<vmem>>, vector<1x128xf32>
    %21 = vector.broadcast %20 : vector<1x128xf32> to vector<16x128xf32>
    %22 = arith.mulf %19, %21 : vector<16x128xf32>
    %cst_19 = arith.constant dense<0.000000e+00> : vector<16xf32>
    %23 = vector.multi_reduction <add>, %22, %cst_19 [1] : vector<16x128xf32> to vector<16xf32>
    %24 = vector.shape_cast %23 : vector<16xf32> to vector<16x1xf32>
    %c0_20 = arith.constant 0 : index
    %25 = memref.load %arg1[%c0_20] : memref<6xf32, #tpu.memory_space<smem>>
    %c1 = arith.constant 1 : index
    %26 = memref.load %arg1[%c1] : memref<6xf32, #tpu.memory_space<smem>>
    %c2 = arith.constant 2 : index
    %27 = memref.load %arg1[%c2] : memref<6xf32, #tpu.memory_space<smem>>
    %c3 = arith.constant 3 : index
    %28 = memref.load %arg1[%c3] : memref<6xf32, #tpu.memory_space<smem>>
    %c4 = arith.constant 4 : index
    %29 = memref.load %arg1[%c4] : memref<6xf32, #tpu.memory_space<smem>>
    %c5 = arith.constant 5 : index
    %30 = memref.load %arg1[%c5] : memref<6xf32, #tpu.memory_space<smem>>
    %31 = vector.extract_strided_slice %0 {offsets = [0, 0], sizes = [16, 3], strides = [1, 1]} : vector<16x8xf32> to vector<16x3xf32>
    %32 = vector.extract_strided_slice %0 {offsets = [0, 3], sizes = [16, 3], strides = [1, 1]} : vector<16x8xf32> to vector<16x3xf32>
    %33 = vector.extract_strided_slice %1 {offsets = [0, 0], sizes = [16, 3], strides = [1, 1]} : vector<16x8xf32> to vector<16x3xf32>
    %34 = vector.extract_strided_slice %1 {offsets = [0, 3], sizes = [16, 3], strides = [1, 1]} : vector<16x8xf32> to vector<16x3xf32>
    %35 = arith.mulf %32, %33 : vector<16x3xf32>
    %cst_21 = arith.constant dense<0.000000e+00> : vector<16xf32>
    %36 = vector.multi_reduction <add>, %35, %cst_21 [1] : vector<16x3xf32> to vector<16xf32>
    %37 = vector.shape_cast %36 : vector<16xf32> to vector<16x1xf32>
    %38 = vector.broadcast %37 : vector<16x1xf32> to vector<16x3xf32>
    %39 = arith.mulf %32, %38 : vector<16x3xf32>
    %40 = arith.subf %33, %39 : vector<16x3xf32>
    %41 = vector.broadcast %27 : f32 to vector<16x3xf32>
    %42 = arith.mulf %41, %40 : vector<16x3xf32>
    %43 = arith.subf %34, %42 : vector<16x3xf32>
    %44 = arith.mulf %32, %31 : vector<16x3xf32>
    %cst_22 = arith.constant dense<0.000000e+00> : vector<16xf32>
    %45 = vector.multi_reduction <add>, %44, %cst_22 [1] : vector<16x3xf32> to vector<16xf32>
    %46 = vector.shape_cast %45 : vector<16xf32> to vector<16x1xf32>
    %47 = vector.broadcast %46 : vector<16x1xf32> to vector<16x3xf32>
    %48 = arith.mulf %47, %32 : vector<16x3xf32>
    %49 = arith.subf %31, %48 : vector<16x3xf32>
    %50 = vector.broadcast %28 : f32 to vector<16x3xf32>
    %51 = arith.mulf %50, %49 : vector<16x3xf32>
    %52 = arith.mulf %31, %51 : vector<16x3xf32>
    %cst_23 = arith.constant dense<0.000000e+00> : vector<16xf32>
    %53 = vector.multi_reduction <add>, %52, %cst_23 [1] : vector<16x3xf32> to vector<16xf32>
    %54 = vector.shape_cast %53 : vector<16xf32> to vector<16x1xf32>
    %55 = vector.broadcast %29 : f32 to vector<16x1xf32>
    %56 = arith.addf %55, %54 : vector<16x1xf32>
    %cst_24 = arith.constant 1.000000e+00 : f32
    %57 = vector.broadcast %cst_24 : f32 to vector<16x1xf32>
    %58 = arith.divf %57, %56 : vector<16x1xf32>
    %59 = arith.mulf %31, %43 : vector<16x3xf32>
    %cst_25 = arith.constant dense<0.000000e+00> : vector<16xf32>
    %60 = vector.multi_reduction <add>, %59, %cst_25 [1] : vector<16x3xf32> to vector<16xf32>
    %61 = vector.shape_cast %60 : vector<16xf32> to vector<16x1xf32>
    %62 = arith.mulf %61, %58 : vector<16x1xf32>
    %63 = vector.broadcast %62 : vector<16x1xf32> to vector<16x3xf32>
    %64 = arith.mulf %51, %63 : vector<16x3xf32>
    %65 = arith.subf %43, %64 : vector<16x3xf32>
    %66 = vector.broadcast %30 : f32 to vector<16x3xf32>
    %67 = arith.mulf %66, %65 : vector<16x3xf32>
    %68 = arith.mulf %31, %32 : vector<16x3xf32>
    %cst_26 = arith.constant dense<0.000000e+00> : vector<16xf32>
    %69 = vector.multi_reduction <add>, %68, %cst_26 [1] : vector<16x3xf32> to vector<16xf32>
    %70 = vector.shape_cast %69 : vector<16xf32> to vector<16x1xf32>
    %71 = arith.mulf %70, %58 : vector<16x1xf32>
    %72 = vector.broadcast %71 : vector<16x1xf32> to vector<16x3xf32>
    %73 = arith.mulf %51, %72 : vector<16x3xf32>
    %74 = arith.subf %32, %73 : vector<16x3xf32>
    %75 = vector.broadcast %30 : f32 to vector<16x3xf32>
    %76 = arith.mulf %75, %74 : vector<16x3xf32>
    %77 = arith.mulf %32, %67 : vector<16x3xf32>
    %cst_27 = arith.constant dense<0.000000e+00> : vector<16xf32>
    %78 = vector.multi_reduction <add>, %77, %cst_27 [1] : vector<16x3xf32> to vector<16xf32>
    %79 = vector.shape_cast %78 : vector<16xf32> to vector<16x1xf32>
    %80 = vector.broadcast %28 : f32 to vector<16x1xf32>
    %81 = arith.mulf %80, %79 : vector<16x1xf32>
    %82 = arith.mulf %32, %76 : vector<16x3xf32>
    %cst_28 = arith.constant dense<0.000000e+00> : vector<16xf32>
    %83 = vector.multi_reduction <add>, %82, %cst_28 [1] : vector<16x3xf32> to vector<16xf32>
    %84 = vector.shape_cast %83 : vector<16xf32> to vector<16x1xf32>
    %85 = vector.broadcast %28 : f32 to vector<16x1xf32>
    %86 = arith.mulf %85, %84 : vector<16x1xf32>
    %cst_29 = arith.constant 1.000000e+00 : f32
    %87 = vector.broadcast %cst_29 : f32 to vector<16x1xf32>
    %88 = arith.addf %87, %86 : vector<16x1xf32>
    %89 = arith.divf %81, %88 : vector<16x1xf32>
    %90 = vector.broadcast %89 : vector<16x1xf32> to vector<16x3xf32>
    %91 = arith.mulf %76, %90 : vector<16x3xf32>
    %92 = arith.subf %67, %91 : vector<16x3xf32>
    %93 = arith.mulf %31, %92 : vector<16x3xf32>
    %cst_30 = arith.constant dense<0.000000e+00> : vector<16xf32>
    %94 = vector.multi_reduction <add>, %93, %cst_30 [1] : vector<16x3xf32> to vector<16xf32>
    %95 = vector.shape_cast %94 : vector<16xf32> to vector<16x1xf32>
    %96 = vector.broadcast %95 : vector<16x1xf32> to vector<16x3xf32>
    %97 = arith.mulf %31, %96 : vector<16x3xf32>
    %98 = arith.subf %92, %97 : vector<16x3xf32>
    %99 = vector.broadcast %25 : f32 to vector<16x3xf32>
    %100 = arith.mulf %99, %98 : vector<16x3xf32>
    %101 = arith.subf %33, %100 : vector<16x3xf32>
    %102 = vector.broadcast %26 : f32 to vector<16x3xf32>
    %103 = arith.mulf %102, %101 : vector<16x3xf32>
    %104 = arith.mulf %33, %103 : vector<16x3xf32>
    %cst_31 = arith.constant dense<0.000000e+00> : vector<16xf32>
    %105 = vector.multi_reduction <add>, %104, %cst_31 [1] : vector<16x3xf32> to vector<16xf32>
    %106 = vector.shape_cast %105 : vector<16xf32> to vector<16x1xf32>
    %107 = arith.mulf %34, %92 : vector<16x3xf32>
    %cst_32 = arith.constant dense<0.000000e+00> : vector<16xf32>
    %108 = vector.multi_reduction <add>, %107, %cst_32 [1] : vector<16x3xf32> to vector<16xf32>
    %109 = vector.shape_cast %108 : vector<16xf32> to vector<16x1xf32>
    %110 = arith.addf %106, %109 : vector<16x1xf32>
    %cst_33 = arith.constant 5.000000e-01 : f32
    %111 = vector.broadcast %cst_33 : f32 to vector<16x1xf32>
    %112 = arith.mulf %111, %110 : vector<16x1xf32>
    %113 = arith.addf %24, %112 : vector<16x1xf32>
    %c0_34 = arith.constant 0 : index
    %c0_35 = arith.constant 0 : index
    %114 = vector.load %arg11[%c0_34, %c0_35] : memref<16x1xf32, #tpu.memory_space<vmem>>, vector<16x1xf32>
    tpu.vector_store %arg11[%c0_34, %c0_35], %113 {strides = array<i32>} : memref<16x1xf32, #tpu.memory_space<vmem>>, vector<16x1xf32>,
    return
  }
  func.func @transform_0(%arg0: i32) -> i32 {
    %c0_i32 = arith.constant 0 : i32
    %c0_i32_0 = arith.constant 0 : i32
    return %c0_i32 : i32
  }
  func.func @transform_1(%arg0: i32) -> (i32, i32) {
    %c0_i32 = arith.constant 0 : i32
    %c0_i32_0 = arith.constant 0 : i32
    return %arg0, %c0_i32 : i32, i32
  }
  func.func @transform_2(%arg0: i32) -> (i32, i32) {
    %c0_i32 = arith.constant 0 : i32
    %c0_i32_0 = arith.constant 0 : i32
    return %arg0, %c0_i32 : i32, i32
  }
  func.func @transform_3(%arg0: i32) -> (i32, i32) {
    %c0_i32 = arith.constant 0 : i32
    %c0_i32_0 = arith.constant 0 : i32
    %c0_i32_1 = arith.constant 0 : i32
    return %c0_i32, %c0_i32_0 : i32, i32
  }
  func.func @transform_4(%arg0: i32) -> (i32, i32) {
    %c0_i32 = arith.constant 0 : i32
    %c0_i32_0 = arith.constant 0 : i32
    %c0_i32_1 = arith.constant 0 : i32
    return %c0_i32, %c0_i32_0 : i32, i32
  }
  func.func @transform_5(%arg0: i32) -> (i32, i32) {
    %c0_i32 = arith.constant 0 : i32
    %c0_i32_0 = arith.constant 0 : i32
    %c0_i32_1 = arith.constant 0 : i32
    return %c0_i32, %c0_i32_0 : i32, i32
  }
  func.func @transform_6(%arg0: i32) -> (i32, i32) {
    %c0_i32 = arith.constant 0 : i32
    %c0_i32_0 = arith.constant 0 : i32
    %c0_i32_1 = arith.constant 0 : i32
    return %c0_i32, %c0_i32_0 : i32, i32
  }
  func.func @transform_7(%arg0: i32) -> (i32, i32) {
    %c0_i32 = arith.constant 0 : i32
    %c0_i32_0 = arith.constant 0 : i32
    %c0_i32_1 = arith.constant 0 : i32
    return %c0_i32, %c0_i32_0 : i32, i32
  }
  func.func @transform_8(%arg0: i32) -> (i32, i32) {
    %c0_i32 = arith.constant 0 : i32
    %c0_i32_0 = arith.constant 0 : i32
    %c0_i32_1 = arith.constant 0 : i32
    return %c0_i32, %c0_i32_0 : i32, i32
  }
  func.func @transform_9(%arg0: i32) -> (i32, i32) {
    %c0_i32 = arith.constant 0 : i32
    %c0_i32_0 = arith.constant 0 : i32
    %c0_i32_1 = arith.constant 0 : i32
    return %c0_i32, %c0_i32_0 : i32, i32
  }
  func.func @transform_10(%arg0: i32) -> (i32, i32) {
    %c0_i32 = arith.constant 0 : i32
    %c0_i32_0 = arith.constant 0 : i32
    return %arg0, %c0_i32 : i32, i32
  }
}

</mosaic_0001>

<bundles_post_ra>
// kernel: hamiltonian_forward.1
= control target key start
LH: loop header
LB: loop body
LE: loop exit
PB: predicated region body
PF: predicated region fallthrough
CT: control target
= control target key end

     0   :  { %15 = vsyncpa [#allocation4], 0  ;;  %s1246_s0 = inlined_call_operand.vmem [shape: f32[6], index: 0, kind: input, shape index: {}]   ;;  %s1247_s1 = inlined_call_operand.vmem [shape: f32[16,8], index: 1, kind: input, shape index: {}]   ;;  %s1248_s2 = inlined_call_operand.vmem [shape: f32[16,8], index: 2, kind: input, shape index: {}]   ;;  %s1249_s3 = inlined_call_operand.hbm [shape: f32[8,128], index: 3, kind: input, shape index: {}]   ;;  %s1250_s4 = inlined_call_operand.vmem [shape: f32[1,128], index: 4, kind: input, shape index: {}]   ;;  %s1251_s5 = inlined_call_operand.vmem [shape: f32[128,128], index: 5, kind: input, shape index: {}]   ;;  %s1252_s6 = inlined_call_operand.vmem [shape: f32[1,128], index: 6, kind: input, shape index: {}]   ;;  %s1253_s7 = inlined_call_operand.vmem [shape: f32[128,128], index: 7, kind: input, shape index: {}]   ;;  %s1254_s8 = inlined_call_operand.vmem [shape: f32[1,128], index: 8, kind: input, shape index: {}]   ;;  %s1255_s9 = inlined_call_operand.vmem [shape: f32[1,128], index: 9, kind: input, shape index: {}]   ;;  %s1256_s10 = inlined_call_operand.vmem [shape: f32[16,1], index: 10, kind: output, shape index: {}]  }
   0x1   :  { %s23_s15 = sshll.u32 %s1246_s0, 4  ;;  %s24_s15 = int_to_ptr.vmem [resolvable:$true] %s23_s15 }
   0x2   :  { %16 = vsyncpa [#allocation3], 0  ;;  %s868_s16 = scalar_lea.vmem %s24_s15, 16  ;;  %p873_p1 = scmp.lt.s32.totalorder %s24_s15, %s24_s15 }
   0x3   :  { %p869_p0 = scmp.ne.s32.totalorder %s24_s15, %s868_s16  ;;  %p874_p2 = scmp.lt.s32.totalorder %s868_s16, %s868_s16 }
   0x5   :  { %p875_p3 = por %p874_p2, %p873_p1 }
   0x7   :  { %p876_p4 = pnand %p875_p3, %p869_p0 }
   0x9   :  { %879 = shalt.err (!%p876_p4)
}
   0xa   :  { %s906_s17 = smov [#allocation2]   ;;  %s907_s18 = smov [#allocation5]  }
   0xb   :  { %26 = dma.vmem_to_smem %s24_s15, 16, %s906_s17, [#allocation4]  }
   0xc   :  { %s37_s19 = sshll.u32 %s907_s18, 4  ;;  %s880_s22 = scalar_lea.hbm %s1249_s3, 128  ;;  %s38_s19 = int_to_ptr.vmem [resolvable:$true] %s37_s19 }
   0xd   :  { %p881_p5 = scmp.ne.s32.totalorder %s1249_s3, %s880_s22  ;;  %p884_p6 = scmp.lt.u32.totalorder %s880_s22, %s1249_s3 }
   0xf   :  { %p886_p7 = pnand %p884_p6, %p881_p5 }
  0x11   :  { %889 = shalt.err (!%p886_p7)
}
  0x12   :  { %s890_s26 = scalar_lea.vmem %s38_s19, 128  ;;  %p895_p9 = scmp.lt.s32.totalorder %s38_s19, %s38_s19 }
  0x13   :  { %p891_p8 = scmp.ne.s32.totalorder %s38_s19, %s890_s26  ;;  %p896_p10 = scmp.lt.s32.totalorder %s890_s26, %s890_s26 }
  0x15   :  { %p897_p11 = por %p896_p10, %p895_p9 }
  0x17   :  { %p898_p12 = pnand %p897_p11, %p891_p8 }
  0x19   :  { %901 = shalt.err (!%p898_p12)
}
  0x1a   :  { %40 = dma.hbm_to_vmem [thread:$0]  %s1249_s3, 128, %s38_s19, [#allocation3]  }
  0x1b   :  { %902 = dma.done.wait [#allocation4], 16  }
  0x1c   :  { %903 = vsyncadd [#allocation4], 4294967280 }
  0x1d   :  { %904 = dma.done.wait [#allocation3], 128  }
  0x1e   :  { %905 = vsyncadd [#allocation3], 4294967168 }
  0x1f   :  { %59 = sfence }
  0x20   :  { %v983_v0 = vld [vmem:[%s1248_s2] sm:$0xff]  ;;  %s908_s11 = smov 3   ;;  %v990_v1 = vld [vmem:[%s1248_s2 + $0x8] sm:$0xff]  ;;  %s909_s2 = smov 125   ;;  %vm393_vm0 = vcmask 23552   ;;  %vm72_vm1 = vcmask 64512  }
  0x21   :  { %377 = vrot.lane.b32.xlu0 %v983_v0, %s908_s11  ;;  %v997_v2 = vld [vmem:[%s1247_s1] sm:$0xff]  ;;  %v1005_v5 = vld [vmem:[%s1247_s1 + $0x8] sm:$0xff]  ;;  %s662_s1 = sld [smem:[#allocation2 + $0x2]]  ;;  %s663_s17 = sld [smem:[#allocation2 + $0x3]]  ;;  %vm646_vm2 = vcmask 7168  }
  0x22   :  { %s664_s18 = sld [smem:[#allocation2 + $0x4]]  ;;  %707 = vmatprep.mubr.msk.f32.mxu0 %vm72_vm1, %v997_v2  ;;  %s665_s19 = sld [smem:[#allocation2 + $0x5]] }
  0x25   :  { %379 = vrot.lane.b32.xlu0 %v990_v1, %s908_s11 }
  0x27   :  { %v412_v24 = vstv %s662_s1  ;;  %v1042_v39 = vstv %s663_s17 }
  0x28   :  { %v470_v56 = vstv %s664_s18 }
  0x29   :  { %425 = vrot.lane.b32.xlu0 %v997_v2, %s908_s11 }
  0x93   :  { %v378_v3 = vpop.permute.xlu0 %377 }
  0x94   :  { %v383_v4 = vmul.f32 %v378_v3, %v997_v2 }
  0x96   :  { %387 = vrot.lane.b32.xlu1 %v383_v4, %s909_s2 }
  0x97   :  { %v380_v6 = vpop.permute.xlu0 %379 }
  0x98   :  { %v384_v7 = vmul.f32 %v380_v6, %v1005_v5 }
  0x9a   :  { %389 = vrot.lane.b32.xlu1 %v384_v7, %s909_s2 }
  0x9b   :  { %v426_v13 = vpop.permute.xlu0 %425 }
  0x9c   :  { %v431_v15 = vmul.f32 %v426_v13, %v997_v2 }
  0x9e   :  { %427 = vrot.lane.b32.xlu1 %v1005_v5, %s908_s11 }
 0x108   :  { %v388_v8 = vpop.permute.xlu1 %387 }
 0x109   :  { %v394_v9 = vsel %vm393_vm0, %v388_v8, 0.0 }
 0x10a   :  { %395 = vadd.xlane.f32.xlu0 %v394_v9  ;;  %v64_v9 = vld [vmem:[#allocation5] sm:$0xff] }
 0x10b   :  { %705 = vmatprep.subr.mxu0 %v64_v9 }
 0x10c   :  { %v390_v10 = vpop.permute.xlu1 %389  ;;  %706 = vmatpush3.msra.mxu0 %v64_v9 }
 0x10d   :  { %v397_v11 = vsel %vm393_vm0, %v390_v10, 0.0  ;;  %708 = vmatmul.mubr.msk.f32.vlgmr.msra.gmra.mrb[0].mxu0 %vm72_vm1, %v1005_v5 }
 0x10e   :  { %398 = vadd.xlane.f32.xlu1 %v397_v11 }
 0x110   :  { %v428_v12 = vpop.permute.xlu1 %427 }
 0x111   :  { %v432_v14 = vmul.f32 %v428_v12, %v1005_v5 }
 0x11f   :  { %437 = vrot.lane.b32.xlu1 %v432_v14, %s909_s2  ;;  %v507_v14 = vstv %s665_s19 }
 0x120   :  { %435 = vrot.lane.b32.xlu0 %v431_v15, %s909_s2 }
 0x197   :  { %v396_v16 = vpop.xlane.xlu0 %395 }
 0x198   :  { %v400_v17 = vmul.f32 %v396_v16, %v997_v2 }
 0x19a   :  { %404 = vrot.lane.b32.xlu0 %v400_v17, %s909_s2 }
 0x19b   :  { %v399_v18 = vpop.xlane.xlu1 %398  ;;  %v436_v20 = vpop.permute.xlu0 %435 }
 0x19c   :  { %v401_v19 = vmul.f32 %v399_v18, %v1005_v5  ;;  %v441_v21 = vsel %vm393_vm0, %v436_v20, 0.0 }
 0x19e   :  { %406 = vrot.lane.b32.xlu1 %v401_v19, %s909_s2 }
 0x19f   :  { %v438_v22 = vpop.permute.xlu1 %437 }
 0x1a0   :  { %v444_v23 = vsel %vm393_vm0, %v438_v22, 0.0 }
 0x1b9   :  { %442 = vadd.xlane.f32.xlu0 %v441_v21 }
 0x1c2   :  { %445 = vadd.xlane.f32.xlu1 %v444_v23  ;;  %v156_v23 = vld [vmem:[%s1251_s5] sm:$0xff] }
 0x20c   :  { %v405_v25 = vpop.permute.xlu0 %404 }
 0x20d   :  { %v410_v26 = vsub.f32 %v983_v0, %v405_v25  ;;  %v158_v25 = vld [vmem:[%s1251_s5 + $0x10] sm:$0xff] }
 0x20f   :  { %v413_v27 = vmul.f32 %v412_v24, %v410_v26 }
 0x210   :  { %v407_v28 = vpop.permute.xlu1 %406 }
 0x211   :  { %v411_v29 = vsub.f32 %v990_v1, %v407_v28  ;;  %417 = vrot.lane.b32.xlu0 %v413_v27, %s908_s11  ;;  %v159_v28 = vld [vmem:[%s1251_s5 + $0x18] sm:$0xff] }
 0x213   :  { %v414_v30 = vmul.f32 %v412_v24, %v411_v29  ;;  %v157_v24 = vld [vmem:[%s1251_s5 + $0x8] sm:$0xff] }
 0x214   :  { %v780_v27 = vpack.c.bf16 %v157_v24, %v156_v23  ;;  %v256_v23 = vld [vmem:[%s1253_s7] sm:$0xff]  ;;  %v257_v24 = vld [vmem:[%s1253_s7 + $0x8] sm:$0xff] }
 0x215   :  { %419 = vrot.lane.b32.xlu1 %v414_v30, %s908_s11  ;;  %v784_v30 = vpack.c.bf16 %v159_v28, %v158_v25  ;;  %v258_v25 = vld [vmem:[%s1253_s7 + $0x10] sm:$0xff]  ;;  %v259_v28 = vld [vmem:[%s1253_s7 + $0x18] sm:$0xff] }
 0x216   :  { %781 = vmatprep.subr.bf16.mxu1 %v780_v27 }
 0x217   :  { %783 = vmatpush3.bf16.msra.mxu1 %v780_v27  ;;  %v812_v27 = vpack.c.bf16 %v257_v24, %v256_v23 }
 0x218   :  { %785 = vmatprep.subr.bf16.mxu1 %v784_v30 }
 0x219   :  { %813 = vmatprep.subr.bf16.mxu0 %v812_v27 }
 0x21a   :  { %815 = vmatpush3.bf16.msra.mxu0 %v812_v27 }
 0x21b   :  { %787 = vmatpush3.bf16.msra.mxu1 %v784_v30 }
 0x246   :  { %v443_v31 = vpop.xlane.xlu0 %442 }
 0x247   :  { %v447_v32 = vmul.f32 %v443_v31, %v997_v2 }
 0x249   :  { %451 = vrot.lane.b32.xlu0 %v447_v32, %s909_s2  ;;  %v161_v32 = vld [vmem:[%s1251_s5 + $0x28] sm:$0xff] }
 0x24f   :  { %v446_v33 = vpop.xlane.xlu1 %445 }
 0x250   :  { %v448_v34 = vmul.f32 %v446_v33, %v1005_v5 }
 0x252   :  { %453 = vrot.lane.b32.xlu1 %v448_v34, %s909_s2 }
 0x283   :  { %v418_v35 = vpop.permute.xlu0 %417 }
 0x284   :  { %v1033_v36 = vsub.f32 %v983_v0, %v418_v35 }
 0x286   :  { %479 = vrot.lane.b32.xlu0 %v1033_v36, %s909_s2 }
 0x287   :  { %v420_v37 = vpop.permute.xlu1 %419 }
 0x288   :  { %v1038_v38 = vsub.f32 %v990_v1, %v420_v37 }
 0x28a   :  { %481 = vrot.lane.b32.xlu1 %v1038_v38, %s909_s2 }
 0x2bb   :  { %v452_v40 = vpop.permute.xlu0 %451 }
 0x2bc   :  { %v457_v41 = vsub.f32 %v997_v2, %v452_v40 }
 0x2be   :  { %v460_v42 = vmul.f32 %v1042_v39, %v457_v41 }
 0x2c0   :  { %v462_v43 = vmul.f32 %v460_v42, %v997_v2 }
 0x2c2   :  { %v464_v44 = vsel %vm393_vm0, %v462_v43, 0.0 }
 0x2c3   :  { %465 = vadd.xlane.f32.xlu0 %v464_v44 }
 0x2c4   :  { %v454_v45 = vpop.permute.xlu1 %453 }
 0x2c5   :  { %v458_v46 = vsub.f32 %v1005_v5, %v454_v45  ;;  %v162_v45 = vld [vmem:[%s1251_s5 + $0x30] sm:$0xff] }
 0x2c7   :  { %v461_v47 = vmul.f32 %v1042_v39, %v458_v46  ;;  %v163_v46 = vld [vmem:[%s1251_s5 + $0x38] sm:$0xff] }
 0x2c9   :  { %v463_v48 = vmul.f32 %v461_v47, %v1005_v5 }
 0x2cb   :  { %v467_v49 = vsel %vm393_vm0, %v463_v48, 0.0  ;;  %v709_v48 = vpop.f32.mrb[0].mxu0 }
 0x2cc   :  { %468 = vadd.xlane.f32.xlu1 %v467_v49  ;;  %v655_v49 = vld [vmem:[%s1250_s4] ss:$0 sm:$0xff] }
 0x2f8   :  { %v480_v50 = vpop.permute.xlu0 %479 }
 0x2f9   :  { %v485_v51 = vmul.f32 %v480_v50, %v997_v2  ;;  %v164_v50 = vld [vmem:[%s1251_s5 + $0x40] sm:$0xff] }
 0x2fb   :  { %v487_v52 = vsel %vm393_vm0, %v485_v51, 0.0  ;;  %v165_v51 = vld [vmem:[%s1251_s5 + $0x48] sm:$0xff] }
 0x2fc   :  { %488 = vadd.xlane.f32.xlu0 %v487_v52  ;;  %v482_v53 = vpop.permute.xlu1 %481  ;;  %v796_v52 = vpack.c.bf16 %v165_v51, %v164_v50  ;;  %v270_v50 = vld [vmem:[%s1253_s7 + $0x70] sm:$0xff]  ;;  %v271_v51 = vld [vmem:[%s1253_s7 + $0x78] sm:$0xff] }
 0x2fd   :  { %v486_v54 = vmul.f32 %v482_v53, %v1005_v5  ;;  %v151_v53 = vadd.f32 %v709_v48, %v655_v49  ;;  %v269_v48 = vld [vmem:[%s1253_s7 + $0x68] sm:$0xff] }
 0x2ff   :  { %v490_v55 = vsel %vm393_vm0, %v486_v54, 0.0  ;;  %v145_v54 = vpop.f32.mrb[1].mxu0 }
 0x300   :  { %491 = vadd.xlane.f32.xlu0 %v490_v55  ;;  %v166_v55 = vld [vmem:[%s1251_s5 + $0x50] sm:$0xff] }
 0x350   :  { %v466_v57 = vpop.xlane.xlu0 %465 }
 0x351   :  { %v471_v58 = vadd.f32 %v470_v56, %v466_v57  ;;  %v146_v57 = vadd.f32 %v655_v49, %v145_v54 }
 0x353   :  { %848 = vrcp.f32 %v471_v58 }
 0x359   :  { %v469_v59 = vpop.xlane.xlu1 %468 }
 0x35a   :  { %v472_v60 = vadd.f32 %v470_v56, %v469_v59  ;;  %v167_v56 = vld [vmem:[%s1251_s5 + $0x58] sm:$0xff]  ;;  %v168_v59 = vld [vmem:[%s1251_s5 + $0x60] sm:$0xff] }
 0x35b   :  { %v800_v58 = vpack.c.bf16 %v167_v56, %v166_v55 }
 0x35c   :  { %850 = vrcp.f32 %v472_v60  ;;  %v169_v60 = vld [vmem:[%s1251_s5 + $0x68] sm:$0xff] }
 0x35d   :  { %v849_v61 = vpop.eup %848  ;;  %852 = vtanh.f32 %v151_v53  ;;  %v658_v53 = vld [vmem:[%s1252_s6] ss:$0 sm:$0xff] }
 0x35e   :  { %v510_v62 = vmul.f32 %v849_v61, %v443_v31  ;;  %v160_v31 = vld [vmem:[%s1251_s5 + $0x20] sm:$0xff]  ;;  %854 = vtanh.f32 %v146_v57 }
 0x35f   :  { %v788_v35 = vpack.c.bf16 %v161_v32, %v160_v31  ;;  %v816_v31 = vpack.c.bf16 %v259_v28, %v258_v25  ;;  %v260_v32 = vld [vmem:[%s1253_s7 + $0x20] sm:$0xff] }
 0x360   :  { %v512_v63 = vmul.f32 %v510_v62, %v460_v42  ;;  %v170_v62 = vld [vmem:[%s1251_s5 + $0x70] sm:$0xff] }
 0x361   :  { %789 = vmatprep.subr.bf16.mxu1 %v788_v35  ;;  %817 = vmatprep.subr.bf16.mxu0 %v816_v31 }
 0x362   :  { %516 = vrot.lane.b32.xlu1 %v512_v63, %s908_s11  ;;  %791 = vmatpush3.bf16.msra.mxu1 %v788_v35  ;;  %v171_v63 = vld [vmem:[%s1251_s5 + $0x78] sm:$0xff] }
 0x363   :  { %819 = vmatpush3.bf16.msra.mxu0 %v816_v31 }
 0x366   :  { %v851_v3 = vpop.eup %850 }
 0x367   :  { %v511_v4 = vmul.f32 %v851_v3, %v446_v33 }
 0x369   :  { %v513_v6 = vmul.f32 %v511_v4, %v461_v47  ;;  %v853_v4 = vpop.eup %852 }
 0x36b   :  { %518 = vrot.lane.b32.xlu0 %v513_v6, %s908_s11  ;;  %v855_v6 = vpop.eup %854 }
 0x36c   :  { %742 = vmatprep.mubr.f32.mxu1 %v855_v6 }
 0x389   :  { %v489_v7 = vpop.xlane.xlu0 %488 }
 0x38a   :  { %v493_v8 = vmul.f32 %v849_v61, %v489_v7  ;;  %v804_v61 = vpack.c.bf16 %v169_v60, %v168_v59 }
 0x38c   :  { %v495_v10 = vmul.f32 %v493_v8, %v460_v42 }
 0x38d   :  { %v492_v11 = vpop.xlane.xlu0 %491 }
 0x38e   :  { %v494_v12 = vmul.f32 %v851_v3, %v492_v11  ;;  %499 = vrot.lane.b32.xlu1 %v495_v10, %s908_s11  ;;  %v808_v3 = vpack.c.bf16 %v171_v63, %v170_v62 }
 0x390   :  { %v496_v13 = vmul.f32 %v494_v12, %v461_v47  ;;  %v792_v47 = vpack.c.bf16 %v163_v46, %v162_v45  ;;  %v267_v45 = vld [vmem:[%s1253_s7 + $0x58] sm:$0xff] }
 0x392   :  { %501 = vrot.lane.b32.xlu1 %v496_v13, %s908_s11  ;;  %793 = vmatprep.subr.bf16.mxu1 %v792_v47 }
 0x393   :  { %795 = vmatpush3.bf16.msra.mxu1 %v792_v47  ;;  %v268_v47 = vld [vmem:[%s1253_s7 + $0x60] sm:$0xff] }
 0x394   :  { %797 = vmatprep.subr.bf16.mxu1 %v796_v52  ;;  %v836_v49 = vpack.c.bf16 %v269_v48, %v268_v47 }
 0x397   :  { %799 = vmatpush3.bf16.msra.mxu1 %v796_v52  ;;  %v840_v52 = vpack.c.bf16 %v271_v51, %v270_v50 }
 0x398   :  { %801 = vmatprep.subr.bf16.mxu1 %v800_v58 }
 0x39b   :  { %803 = vmatpush3.bf16.msra.mxu1 %v800_v58 }
 0x39c   :  { %805 = vmatprep.subr.bf16.mxu1 %v804_v61 }
 0x39f   :  { %807 = vmatpush3.bf16.msra.mxu1 %v804_v61 }
 0x3a0   :  { %809 = vmatprep.subr.bf16.mxu1 %v808_v3 }
 0x3a3   :  { %811 = vmatpush3.bf16.msra.mxu1 %v808_v3 }
 0x3a6   :  { %743 = vmatmul.mubr.f32.vlgmr.msra.gmra.mrb[0].mxu1 %v853_v4 }
 0x3d4   :  { %v517_v15 = vpop.permute.xlu1 %516 }
 0x3d5   :  { %v522_v16 = vsub.f32 %v997_v2, %v517_v15 }
 0x3d7   :  { %v1063_v17 = vmul.f32 %v522_v16, %v507_v14 }
 0x3d9   :  { %v544_v18 = vmul.f32 %v1063_v17, %v997_v2 }
 0x3db   :  { %548 = vrot.lane.b32.xlu0 %v544_v18, %s909_s2 }
 0x3dd   :  { %v519_v19 = vpop.permute.xlu0 %518 }
 0x3de   :  { %v523_v20 = vsub.f32 %v1005_v5, %v519_v19 }
 0x3e0   :  { %v1069_v21 = vmul.f32 %v523_v20, %v507_v14 }
 0x3e2   :  { %v545_v22 = vmul.f32 %v1069_v21, %v1005_v5 }
 0x3e4   :  { %550 = vrot.lane.b32.xlu1 %v545_v22, %s909_s2 }
 0x400   :  { %v500_v26 = vpop.permute.xlu1 %499 }
 0x401   :  { %v505_v29 = vsub.f32 %v1033_v36, %v500_v26 }
 0x403   :  { %v1093_v33 = vmul.f32 %v507_v14, %v505_v29 }
 0x404   :  { %v502_v34 = vpop.permute.xlu1 %501 }
 0x405   :  { %v506_v37 = vsub.f32 %v1038_v38, %v502_v34  ;;  %v526_v36 = vmul.f32 %v1093_v33, %v997_v2  ;;  %v261_v34 = vld [vmem:[%s1253_s7 + $0x28] sm:$0xff] }
 0x407   :  { %v1098_v40 = vmul.f32 %v507_v14, %v506_v37  ;;  %530 = vrot.lane.b32.xlu0 %v526_v36, %s909_s2 }
 0x409   :  { %v527_v41 = vmul.f32 %v1098_v40, %v1005_v5 }
 0x40b   :  { %532 = vrot.lane.b32.xlu1 %v527_v41, %s909_s2  ;;  %v262_v41 = vld [vmem:[%s1253_s7 + $0x30] sm:$0xff] }
 0x44d   :  { %v549_v42 = vpop.permute.xlu0 %548 }
 0x44e   :  { %v554_v43 = vsel %vm393_vm0, %v549_v42, 0.0  ;;  %v263_v42 = vld [vmem:[%s1253_s7 + $0x38] sm:$0xff] }
 0x44f   :  { %555 = vadd.xlane.f32.xlu0 %v554_v43 }
 0x456   :  { %v551_v38 = vpop.permute.xlu1 %550 }
 0x457   :  { %v557_v44 = vsel %vm393_vm0, %v551_v38, 0.0  ;;  %v265_v38 = vld [vmem:[%s1253_s7 + $0x48] sm:$0xff] }
 0x458   :  { %558 = vadd.xlane.f32.xlu1 %v557_v44 }
 0x479   :  { %v531_v7 = vpop.permute.xlu0 %530  ;;  %v744_v54 = vpop.f32.mrb[0].mxu1 }
 0x47a   :  { %v536_v8 = vsel %vm393_vm0, %v531_v7, 0.0  ;;  %v251_v55 = vadd.f32 %v744_v54, %v658_v53  ;;  %v245_v56 = vpop.f32.mrb[1].mxu1 }
 0x47b   :  { %537 = vadd.xlane.f32.xlu0 %v536_v8  ;;  %v246_v57 = vadd.f32 %v658_v53, %v245_v56 }
 0x47d   :  { %v533_v9 = vpop.permute.xlu1 %532 }
 0x47e   :  { %v539_v10 = vsel %vm393_vm0, %v533_v9, 0.0 }
 0x47f   :  { %540 = vadd.xlane.f32.xlu0 %v539_v10 }
 0x4dc   :  { %v556_v11 = vpop.xlane.xlu0 %555 }
 0x4dd   :  { %v560_v12 = vmul.f32 %v556_v11, %v1042_v39  ;;  %v659_v11 = vld [vmem:[%s1254_s8] ss:$0 sm:$0xff]  ;;  %s661_s8 = sld [smem:[#allocation2 + $0x1]] }
 0x4df   :  { %v562_v14 = vadd.f32 1.0, %v560_v12 }
 0x4e1   :  { %856 = vrcp.f32 %v562_v14 }
 0x4e3   :  { %v613_v31 = vstv %s661_s8 }
 0x4e5   :  { %v559_v13 = vpop.xlane.xlu1 %558 }
 0x4e6   :  { %v561_v15 = vmul.f32 %v559_v13, %v1042_v39 }
 0x4e8   :  { %v563_v16 = vadd.f32 1.0, %v561_v15 }
 0x4ea   :  { %858 = vrcp.f32 %v563_v16 }
 0x4eb   :  { %v857_v20 = vpop.eup %856  ;;  %860 = vtanh.f32 %v251_v55 }
 0x4ec   :  { %862 = vtanh.f32 %v246_v57 }
 0x4f4   :  { %v859_v35 = vpop.eup %858 }
 0x4f5   :  { %v861_v58 = vpop.eup %860 }
 0x4f6   :  { %v863_v59 = vpop.eup %862 }
 0x4f7   :  { %777 = vmatprep.mubr.f32.mxu0 %v863_v59 }
 0x508   :  { %v538_v18 = vpop.xlane.xlu0 %537 }
 0x509   :  { %v542_v19 = vmul.f32 %v538_v18, %v1042_v39 }
 0x50b   :  { %v565_v22 = vmul.f32 %v857_v20, %v542_v19 }
 0x50c   :  { %v541_v26 = vpop.xlane.xlu0 %540 }
 0x50d   :  { %v568_v29 = vmul.f32 %v565_v22, %v1063_v17  ;;  %v543_v30 = vmul.f32 %v541_v26, %v1042_v39  ;;  %v820_v17 = vpack.c.bf16 %v261_v34, %v260_v32 }
 0x50f   :  { %v567_v37 = vmul.f32 %v859_v35, %v543_v30  ;;  %v1165_v36 = vsub.f32 %v1093_v33, %v568_v29  ;;  %821 = vmatprep.subr.bf16.mxu0 %v820_v17  ;;  %v824_v33 = vpack.c.bf16 %v263_v42, %v262_v41 }
 0x510   :  { %823 = vmatpush3.bf16.msra.mxu0 %v820_v17 }
 0x511   :  { %v569_v39 = vmul.f32 %v567_v37, %v1069_v21  ;;  %574 = vrot.lane.b32.xlu1 %v1165_v36, %s909_s2  ;;  %v264_v21 = vld [vmem:[%s1253_s7 + $0x40] sm:$0xff]  ;;  %825 = vmatprep.subr.bf16.mxu0 %v824_v33  ;;  %v624_v10 = vmul.f32 %v1165_v36, %v983_v0 }
 0x512   :  { %v828_v44 = vpack.c.bf16 %v265_v38, %v264_v21 }
 0x513   :  { %v1177_v43 = vsub.f32 %v1098_v40, %v569_v39  ;;  %v266_v40 = vld [vmem:[%s1253_s7 + $0x50] sm:$0xff] }
 0x514   :  { %827 = vmatpush3.bf16.msra.mxu0 %v824_v33  ;;  %v832_v46 = vpack.c.bf16 %v267_v45, %v266_v40 }
 0x515   :  { %576 = vrot.lane.b32.xlu0 %v1177_v43, %s909_s2  ;;  %829 = vmatprep.subr.bf16.mxu0 %v828_v44  ;;  %v625_v28 = vmul.f32 %v1177_v43, %v990_v1 }
 0x518   :  { %831 = vmatpush3.bf16.msra.mxu0 %v828_v44 }
 0x519   :  { %833 = vmatprep.subr.bf16.mxu0 %v832_v46 }
 0x51c   :  { %835 = vmatpush3.bf16.msra.mxu0 %v832_v46 }
 0x51d   :  { %837 = vmatprep.subr.bf16.mxu0 %v836_v49 }
 0x520   :  { %839 = vmatpush3.bf16.msra.mxu0 %v836_v49 }
 0x521   :  { %841 = vmatprep.subr.bf16.mxu0 %v840_v52 }
 0x524   :  { %843 = vmatpush3.bf16.msra.mxu0 %v840_v52 }
 0x527   :  { %778 = vmatmul.mubr.f32.vlgmr.msra.gmra.mrb[2].mxu0 %v861_v58 }
 0x583   :  { %v575_v60 = vpop.permute.xlu1 %574 }
 0x584   :  { %v580_v61 = vmul.f32 %v575_v60, %v997_v2 }
 0x586   :  { %v582_v62 = vsel %vm393_vm0, %v580_v61, 0.0 }
 0x587   :  { %v577_v63 = vpop.permute.xlu0 %576  ;;  %583 = vadd.xlane.f32.xlu1 %v582_v62 }
 0x588   :  { %v581_v3 = vmul.f32 %v577_v63, %v1005_v5 }
 0x58a   :  { %v585_v4 = vsel %vm393_vm0, %v581_v3, 0.0 }
 0x58b   :  { %586 = vadd.xlane.f32.xlu0 %v585_v4 }
 0x5fa   :  { %v779_v12 = vpop.f32.mrb[2].mxu0 }
 0x5fb   :  { %v351_v13 = vadd.f32 %v779_v12, %v659_v11  ;;  %v345_v15 = vpop.f32.mrb[3].mxu0 }
 0x5fc   :  { %v346_v16 = vadd.f32 %v659_v11, %v345_v15 }
 0x5fd   :  { %864 = vtanh.f32 %v351_v13 }
 0x5fe   :  { %866 = vtanh.f32 %v346_v16 }
 0x607   :  { %v865_v14 = vpop.eup %864 }
 0x608   :  { %v867_v18 = vpop.eup %866 }
 0x614   :  { %v584_v6 = vpop.xlane.xlu1 %583 }
 0x615   :  { %v588_v7 = vmul.f32 %v584_v6, %v997_v2  ;;  %v660_v2 = vld [vmem:[%s1255_s9] ss:$0 sm:$0xff] }
 0x616   :  { %v363_v19 = vmul.f32 %v867_v18, %v660_v2 }
 0x617   :  { %592 = vrot.lane.b32.xlu1 %v588_v7, %s908_s11 }
 0x618   :  { %v587_v8 = vpop.xlane.xlu0 %586 }
 0x619   :  { %v589_v9 = vmul.f32 %v587_v8, %v1005_v5  ;;  %v364_v5 = vmul.f32 %v865_v14, %v660_v2 }
 0x61b   :  { %594 = vrot.lane.b32.xlu0 %v589_v9, %s908_s11  ;;  %s369_s11 = sld [smem:[#allocation2]] }
 0x61f   :  { %628 = vrot.lane.b32.xlu0 %v624_v10, %s909_s2 }
 0x621   :  { %v600_v20 = vstv %s369_s11 }
 0x63e   :  { %365 = vadd.xlane.f32.xlu0 %v363_v19 }
 0x689   :  { %v593_v22 = vpop.permute.xlu1 %592 }
 0x68a   :  { %v598_v23 = vsub.f32 %v1165_v36, %v593_v22 }
 0x68c   :  { %v601_v24 = vmul.f32 %v600_v20, %v598_v23 }
 0x68d   :  { %v595_v25 = vpop.permute.xlu0 %594 }
 0x68e   :  { %v599_v26 = vsub.f32 %v1177_v43, %v595_v25  ;;  %605 = vrot.lane.b32.xlu1 %v601_v24, %s909_s2 }
 0x690   :  { %v602_v27 = vmul.f32 %v600_v20, %v599_v26 }
 0x691   :  { %v629_v29 = vpop.permute.xlu0 %628 }
 0x692   :  { %607 = vrot.lane.b32.xlu1 %v602_v27, %s909_s2  ;;  %v634_v30 = vsel %vm393_vm0, %v629_v29, 0.0 }
 0x696   :  { %630 = vrot.lane.b32.xlu1 %v625_v28, %s909_s2 }
 0x6ba   :  { %367 = vadd.xlane.f32.xlu1 %v364_v5 }
 0x6be   :  { %635 = vadd.xlane.f32.xlu1 %v634_v30 }
 0x6cb   :  { %v366_v44 = vpop.xlane.xlu0 %365 }
 0x700   :  { %v606_v32 = vpop.permute.xlu1 %605 }
 0x701   :  { %v611_v34 = vsub.f32 %v983_v0, %v606_v32 }
 0x703   :  { %v614_v35 = vmul.f32 %v613_v31, %v611_v34 }
 0x704   :  { %v608_v37 = vpop.permute.xlu1 %607 }
 0x705   :  { %v612_v36 = vsub.f32 %v990_v1, %v608_v37  ;;  %v616_v17 = vmul.f32 %v614_v35, %v983_v0 }
 0x707   :  { %v615_v39 = vmul.f32 %v613_v31, %v612_v36  ;;  %v618_v41 = vsel %vm393_vm0, %v616_v17, 0.0 }
 0x708   :  { %619 = vadd.xlane.f32.xlu0 %v618_v41  ;;  %v631_v33 = vpop.permute.xlu1 %630 }
 0x709   :  { %v617_v42 = vmul.f32 %v615_v39, %v990_v1  ;;  %v637_v21 = vsel %vm393_vm0, %v631_v33, 0.0 }
 0x70b   :  { %v621_v43 = vsel %vm393_vm0, %v617_v42, 0.0 }
 0x70c   :  { %622 = vadd.xlane.f32.xlu0 %v621_v43 }
 0x710   :  { %638 = vadd.xlane.f32.xlu0 %v637_v21 }
 0x747   :  { %v368_v38 = vpop.xlane.xlu1 %367 }
 0x74b   :  { %v636_v40 = vpop.xlane.xlu1 %635 }
 0x795   :  { %v620_v45 = vpop.xlane.xlu0 %619 }
 0x796   :  { %v640_v46 = vadd.f32 %v636_v40, %v620_v45 }
 0x798   :  { %v642_v47 = vmul.f32 0.5, %v640_v46 }
 0x799   :  { %v623_v0 = vpop.xlane.xlu0 %622 }
 0x79a   :  { %v644_v48 = vadd.f32 %v642_v47, %v366_v44 }
 0x79c   :  { %647 = vst.msk [vmem:[%s1256_s10] sm:$0xff] %vm646_vm2, %v644_v48 }
 0x79d   :  { %v639_v1 = vpop.xlane.xlu0 %638 }
 0x79e   :  { %v641_v49 = vadd.f32 %v639_v1, %v623_v0 }
 0x7a0   :  { %v643_v50 = vmul.f32 0.5, %v641_v49 }
 0x7a2   :  { %v645_v51 = vadd.f32 %v643_v50, %v368_v38 }
 0x7a4   :  { %648 = vst.msk [vmem:[%s1256_s10 + $0x8] sm:$0xff] %vm646_vm2, %v645_v51 }
 0x7a5   :  { %653 = vsyncpa [#allocation3], 1 }
 0x7a6   :  { %654 = vsyncpa [#allocation4], 1 }

</bundles_post_ra>
